<compile_context>
chip_gen: v7x
topology: tpu7x:2x2x1
jax: 0.10.0
libtpu: 0.0.40
codegen_flags: <defaults>
</compile_context>

<pallas_src>
import jax
import jax.numpy as jnp
from jax.experimental import pallas as pl
from jax.experimental.pallas import tpu as pltpu


def _cbam_kernel(x_ref, w1t_ref, w2t_ref, conv_ref, o_ref):
    """x_ref: (Bt, C, HW); w1t_ref: (C, Cr); w2t_ref: (Cr, C); conv_ref: (2*HW, HW)."""
    Bt, C, HW = x_ref.shape
    x = x_ref[...]                                                    # (Bt, C, HW)

    # ---------------- channel attention (FC mode) ----------------
    # AdaptiveAvgPool2d(1) / AdaptiveMaxPool2d(1): lane reductions over H*W.
    avg_c = jnp.sum(x, axis=2) * (1.0 / float(HW))                    # (Bt, C)
    max_c = jnp.max(x, axis=2)                                        # (Bt, C)

    # Shared MLP (Linear C->Cr, ReLU, Linear Cr->C, no biases), fused over
    # {avg, max} x batch-tile into a single pair of tiny matmuls.
    p = jnp.concatenate([avg_c, max_c], axis=0)                       # (2*Bt, C)
    h1 = jnp.maximum(
        jnp.dot(p, w1t_ref[...], preferred_element_type=jnp.float32), 0.0)   # (2*Bt, Cr)
    mlp_out = jnp.dot(h1, w2t_ref[...], preferred_element_type=jnp.float32)  # (2*Bt, C)
    v = jax.nn.sigmoid(mlp_out[:Bt] + mlp_out[Bt:])                   # (Bt, C)

    x_ca = x * v[:, :, None]                                          # (Bt, C, HW), vregs only

    # ---------------- spatial attention ----------------
    avg_s = jnp.mean(x_ca, axis=1)                                    # (Bt, HW)
    max_s = jnp.max(x_ca, axis=1)                                     # (Bt, HW)
    pooled = jnp.concatenate([avg_s, max_s], axis=1)                  # (Bt, 2*HW), lane concat

    # Conv2d(2->1, KxK, SAME padding, no bias) as one MXU matmul against the
    # precomputed masked tap matrix (boundary masks + conv weights baked in).
    acc = jnp.dot(pooled, conv_ref[...], preferred_element_type=jnp.float32)  # (Bt, HW)
    mask = jax.nn.sigmoid(acc)

    # Single fused lane-dense store: channel-scaled input times spatial mask.
    o_ref[...] = (x_ca * mask[:, None, :]).astype(o_ref.dtype)


def _build_spatial_conv_matrix(wsp, H, W):
    """Dense (2*HW, HW) matrix implementing the KxK 'SAME' cross-correlation over
    the two pooled maps; rows [0, HW) act on the avg map, rows [HW, 2*HW) on max."""
    K = wsp.shape[-1]
    pad = (K - 1) // 2   # TODO(synk): matches PyTorch SAME padding for odd K only.
    HW = H * W
    idx = jnp.arange(HW)
    h_pix, w_pix = idx // W, idx % W
    # PyTorch cross-correlation: out[hd,wd] = sum_{i,j} w[i,j] * in[hd+i-pad, wd+j-pad]
    # => tap indices i = h_src - h_dst + pad, j = w_src - w_dst + pad.
    di = h_pix[:, None] - h_pix[None, :] + pad                        # (HW_src, HW_dst)
    dj = w_pix[:, None] - w_pix[None, :] + pad
    valid = (di >= 0) & (di < K) & (dj >= 0) & (dj < K)               # padding mask baked in
    wsp_f = jnp.asarray(wsp, jnp.float32)                             # (2, K, K)
    taps = wsp_f[:, jnp.clip(di, 0, K - 1), jnp.clip(dj, 0, K - 1)]   # (2, HW, HW)
    mat = jnp.where(valid[None], taps, 0.0)
    return mat.reshape(2 * HW, HW)


def cbam_pallas(x, w1, w2, wsp):
    """x: (B,C,H,W) f32; w1: (Cr,C); w2: (C,Cr); wsp: (2,K,K) conv weight (out=1)."""
    B, C, H, W = x.shape
    Cr = w1.shape[0]
    HW = H * W

    # TODO(synk): the dense conv matrix is O(2*HW*HW); for very large spatial sizes
    # (HW >> ~2K pixels) a roll/mask tap loop should be used instead of this matmul.
    x2 = x.reshape(B, C, HW)                                          # lane-dense, free reshape
    w1t = jnp.transpose(jnp.asarray(w1, jnp.float32))                 # (C, Cr)
    w2t = jnp.transpose(jnp.asarray(w2, jnp.float32))                 # (Cr, C)
    conv_mat = _build_spatial_conv_matrix(wsp, H, W)                  # (2*HW, HW), 512 KiB @ HW=256

    # Batch tile: capped by vreg pressure (kernel holds x and x_ca as live values,
    # ~2 slabs per batch element; keep under ~96 KiB vs the 256 KiB vreg file) and
    # sized so the grid has >= 2 steps (v7x megacore sharding) and >= 4 once B
    # allows (prefetch/writeback overlap).  VMEM capacity is not binding here.
    slab_bytes = C * HW * 4
    bt_vreg_cap = max(1, (96 * 1024) // (2 * slab_bytes))
    target_steps = 4 if B >= 4 else min(B, 2)
    bt = max(1, min(B, bt_vreg_cap, max(1, B // max(target_steps, 1))))
    while B % bt:
        bt -= 1

    out = pl.pallas_call(
        _cbam_kernel,
        out_shape=jax.ShapeDtypeStruct((B, C, HW), x.dtype),
        grid_spec=pltpu.PrefetchScalarGridSpec(
            num_scalar_prefetch=0,
            grid=(B // bt,),
            in_specs=[
                pl.BlockSpec((bt, C, HW), lambda b: (b, 0, 0)),       # x slabs, lane-dense
                pl.BlockSpec((C, Cr), lambda b: (0, 0)),              # fc1 weight (transposed)
                pl.BlockSpec((Cr, C), lambda b: (0, 0)),              # fc2 weight (transposed)
                pl.BlockSpec((2 * HW, HW), lambda b: (0, 0)),         # masked spatial conv matrix
            ],
            out_specs=pl.BlockSpec((bt, C, HW), lambda b: (b, 0, 0)),
        ),
        compiler_params=pltpu.CompilerParams(
            dimension_semantics=("parallel",)),                       # independent batch tiles
    )(x2, w1t, w2t, conv_mat)
    return out.reshape(B, C, H, W)


def cbam_ref(x, w1, w2, wsp):
    """Pure-JAX reference mirroring the PyTorch CBAMBlock forward."""
    avg = jnp.mean(x, axis=(2, 3))                                    # (B, C)
    mx = jnp.max(x, axis=(2, 3))                                      # (B, C)

    def mlp(p):
        return jax.nn.relu(p @ w1.T) @ w2.T

    v = jax.nn.sigmoid(mlp(avg) + mlp(mx))                            # (B, C)
    x_ca = x * v[:, :, None, None]

    avg_s = jnp.mean(x_ca, axis=1, keepdims=True)                     # (B,1,H,W)
    max_s = jnp.max(x_ca, axis=1, keepdims=True)                      # (B,1,H,W)
    m = jnp.concatenate([avg_s, max_s], axis=1)                       # (B,2,H,W)
    K = wsp.shape[-1]
    conv = jax.lax.conv_general_dilated(
        m, wsp.reshape(1, 2, K, K), window_strides=(1, 1), padding="SAME",
        dimension_numbers=("NCHW", "OIHW", "NCHW"))
    return x_ca * jax.nn.sigmoid(conv)


if __name__ == "__main__":
    # CBAMBlock(channel_attention_mode='FC', spatial_attention_kernel_size=7,
    #           channels=32, ratio=8)
    B, C, H, W = 2, 32, 16, 16
    ratio, K = 8, 7
    Cr = C // ratio

    key = jax.random.PRNGKey(0)
    kx, k1, k2, k3 = jax.random.split(key, 4)
    x = jax.random.normal(kx, (B, C, H, W), jnp.float32)
    # Deterministic synthetic parameters (shapes follow nn.Linear / nn.Conv2d):
    w1 = jax.random.normal(k1, (Cr, C), jnp.float32) * 0.2     # Linear(C -> C//ratio), no bias
    w2 = jax.random.normal(k2, (C, Cr), jnp.float32) * 0.2     # Linear(C//ratio -> C), no bias
    wsp = jax.random.normal(k3, (2, K, K), jnp.float32) * 0.2  # Conv2d(2 -> 1, KxK), no bias

    out = jax.block_until_ready(cbam_pallas(x, w1, w2, wsp))
    ref = cbam_ref(x, w1, w2, wsp)

    assert out.shape == (B, C, H, W)
    max_err = float(jnp.max(jnp.abs(out - ref)))
    if max_err > 1e-4:
        raise AssertionError(f"Pallas/JAX mismatch: max abs err = {max_err}")
    print("KERNEL_OK")
</pallas_src>

<mosaic_0001>
module attributes {stable_mosaic.version = 11 : i64} {
  func.func @_cbam_kernel(%arg0: i32, %arg1: memref<1x32x256xf32, #tpu.memory_space<vmem>>, %arg2: memref<32x4xf32, #tpu.memory_space<vmem>>, %arg3: memref<4x32xf32, #tpu.memory_space<vmem>>, %arg4: memref<512x256xf32, #tpu.memory_space<vmem>>, %arg5: memref<1x32x256xf32, #tpu.memory_space<vmem>>) attributes {dimension_semantics = [#tpu.dimension_semantics<parallel>], iteration_bounds = array<i64: 2>, scalar_prefetch = 0 : i64, scratch_operands = 0 : i64, tpu.core_type = #tpu.core_type<tc>, window_params = [{transform_indices = @transform_0, window_bounds = array<i64: 1, 32, 256>}, {pipeline_mode = #tpu.pipeline_mode<synchronous>, transform_indices = @transform_1, window_bounds = array<i64: 32, 4>}, {pipeline_mode = #tpu.pipeline_mode<synchronous>, transform_indices = @transform_2, window_bounds = array<i64: 4, 32>}, {pipeline_mode = #tpu.pipeline_mode<synchronous>, transform_indices = @transform_3, window_bounds = array<i64: 512, 256>}, {transform_indices = @transform_4, window_bounds = array<i64: 1, 32, 256>}]} {
    %c0 = arith.constant 0 : index
    %c0_0 = arith.constant 0 : index
    %c0_1 = arith.constant 0 : index
    %0 = vector.load %arg1[%c0, %c0_0, %c0_1] : memref<1x32x256xf32, #tpu.memory_space<vmem>>, vector<1x32x256xf32>
    %cst = arith.constant dense<0.000000e+00> : vector<1x32xf32>
    %1 = vector.multi_reduction <add>, %0, %cst [2] : vector<1x32x256xf32> to vector<1x32xf32>
    %cst_2 = arith.constant 3.906250e-03 : f32
    %2 = vector.broadcast %cst_2 : f32 to vector<1x32xf32>
    %3 = arith.mulf %1, %2 : vector<1x32xf32>
    %cst_3 = arith.constant dense<0xFF800000> : vector<1x32xf32>
    %4 = vector.multi_reduction <maximumf>, %0, %cst_3 [2] : vector<1x32x256xf32> to vector<1x32xf32>
    %5 = tpu.concatenate %3, %4 in 0 : vector<1x32xf32>, vector<1x32xf32> -> vector<2x32xf32>
    %c0_4 = arith.constant 0 : index
    %c0_5 = arith.constant 0 : index
    %6 = vector.load %arg2[%c0_4, %c0_5] : memref<32x4xf32, #tpu.memory_space<vmem>>, vector<32x4xf32>
    %cst_6 = arith.constant dense<0.000000e+00> : vector<2x4xf32>
    %7 = tpu.matmul %5, %6, %cst_6 {dimension_numbers = #tpu.dot_dimension_numbers<[1], [0], [0], [1], [0, 0, 1, 1], [], []>} : vector<2x32xf32>, vector<32x4xf32>, vector<2x4xf32> -> vector<2x4xf32>
    %cst_7 = arith.constant 0.000000e+00 : f32
    %8 = vector.broadcast %cst_7 : f32 to vector<2x4xf32>
    %9 = arith.maximumf %7, %8 : vector<2x4xf32>
    %c0_8 = arith.constant 0 : index
    %c0_9 = arith.constant 0 : index
    %10 = vector.load %arg3[%c0_8, %c0_9] : memref<4x32xf32, #tpu.memory_space<vmem>>, vector<4x32xf32>
    %cst_10 = arith.constant dense<0.000000e+00> : vector<2x32xf32>
    %11 = tpu.matmul %9, %10, %cst_10 {dimension_numbers = #tpu.dot_dimension_numbers<[1], [0], [0], [1], [0, 0, 1, 1], [], []>} : vector<2x4xf32>, vector<4x32xf32>, vector<2x32xf32> -> vector<2x32xf32>
    %12 = vector.extract_strided_slice %11 {offsets = [0, 0], sizes = [1, 32], strides = [1, 1]} : vector<2x32xf32> to vector<1x32xf32>
    %13 = vector.extract_strided_slice %11 {offsets = [1, 0], sizes = [1, 32], strides = [1, 1]} : vector<2x32xf32> to vector<1x32xf32>
    %14 = arith.addf %12, %13 : vector<1x32xf32>
    %15 = arith.negf %14 : vector<1x32xf32>
    %16 = math.exp %15 : vector<1x32xf32>
    %cst_11 = arith.constant 1.000000e+00 : f32
    %17 = vector.broadcast %cst_11 : f32 to vector<1x32xf32>
    %18 = arith.addf %17, %16 : vector<1x32xf32>
    %19 = arith.divf %17, %18 : vector<1x32xf32>
    %20 = vector.shape_cast %19 : vector<1x32xf32> to vector<1x32x1xf32>
    %21 = vector.broadcast %20 : vector<1x32x1xf32> to vector<1x32x256xf32>
    %22 = arith.mulf %0, %21 : vector<1x32x256xf32>
    %cst_12 = arith.constant dense<0.000000e+00> : vector<1x256xf32>
    %23 = vector.multi_reduction <add>, %22, %cst_12 [1] : vector<1x32x256xf32> to vector<1x256xf32>
    %cst_13 = arith.constant 3.200000e+01 : f32
    %24 = vector.broadcast %cst_13 : f32 to vector<1x256xf32>
    %25 = arith.divf %23, %24 : vector<1x256xf32>
    %cst_14 = arith.constant dense<0xFF800000> : vector<1x256xf32>
    %26 = vector.multi_reduction <maximumf>, %22, %cst_14 [1] : vector<1x32x256xf32> to vector<1x256xf32>
    %27 = tpu.concatenate %25, %26 in 1 : vector<1x256xf32>, vector<1x256xf32> -> vector<1x512xf32>
    %c0_15 = arith.constant 0 : index
    %c0_16 = arith.constant 0 : index
    %28 = vector.load %arg4[%c0_15, %c0_16] : memref<512x256xf32, #tpu.memory_space<vmem>>, vector<512x256xf32>
    %cst_17 = arith.constant dense<0.000000e+00> : vector<1x256xf32>
    %29 = tpu.matmul %27, %28, %cst_17 {dimension_numbers = #tpu.dot_dimension_numbers<[1], [0], [0], [1], [0, 0, 1, 1], [], []>} : vector<1x512xf32>, vector<512x256xf32>, vector<1x256xf32> -> vector<1x256xf32>
    %30 = arith.negf %29 : vector<1x256xf32>
    %31 = math.exp %30 : vector<1x256xf32>
    %cst_18 = arith.constant 1.000000e+00 : f32
    %32 = vector.broadcast %cst_18 : f32 to vector<1x256xf32>
    %33 = arith.addf %32, %31 : vector<1x256xf32>
    %34 = arith.divf %32, %33 : vector<1x256xf32>
    %35 = vector.shape_cast %34 : vector<1x256xf32> to vector<1x1x256xf32>
    %36 = vector.broadcast %35 : vector<1x1x256xf32> to vector<1x32x256xf32>
    %37 = arith.mulf %22, %36 : vector<1x32x256xf32>
    %c0_19 = arith.constant 0 : index
    %c0_20 = arith.constant 0 : index
    %c0_21 = arith.constant 0 : index
    %38 = vector.load %arg5[%c0_19, %c0_20, %c0_21] : memref<1x32x256xf32, #tpu.memory_space<vmem>>, vector<1x32x256xf32>
    tpu.vector_store %arg5[%c0_19, %c0_20, %c0_21], %37 {strides = array<i32>} : memref<1x32x256xf32, #tpu.memory_space<vmem>>, vector<1x32x256xf32>,
    return
  }
  func.func @transform_0(%arg0: i32) -> (i32, i32, i32) {
    %c0_i32 = arith.constant 0 : i32
    %c0_i32_0 = arith.constant 0 : i32
    %c0_i32_1 = arith.constant 0 : i32
    return %arg0, %c0_i32, %c0_i32_0 : i32, i32, i32
  }
  func.func @transform_1(%arg0: i32) -> (i32, i32) {
    %c0_i32 = arith.constant 0 : i32
    %c0_i32_0 = arith.constant 0 : i32
    %c0_i32_1 = arith.constant 0 : i32
    return %c0_i32, %c0_i32_0 : i32, i32
  }
  func.func @transform_2(%arg0: i32) -> (i32, i32) {
    %c0_i32 = arith.constant 0 : i32
    %c0_i32_0 = arith.constant 0 : i32
    %c0_i32_1 = arith.constant 0 : i32
    return %c0_i32, %c0_i32_0 : i32, i32
  }
  func.func @transform_3(%arg0: i32) -> (i32, i32) {
    %c0_i32 = arith.constant 0 : i32
    %c0_i32_0 = arith.constant 0 : i32
    %c0_i32_1 = arith.constant 0 : i32
    return %c0_i32, %c0_i32_0 : i32, i32
  }
  func.func @transform_4(%arg0: i32) -> (i32, i32, i32) {
    %c0_i32 = arith.constant 0 : i32
    %c0_i32_0 = arith.constant 0 : i32
    %c0_i32_1 = arith.constant 0 : i32
    return %arg0, %c0_i32, %c0_i32_0 : i32, i32, i32
  }
}

</mosaic_0001>

<bundles_post_ra>
// kernel: tpu_custom_call.1
= control target key start
LH: loop header
LB: loop body
LE: loop exit
PB: predicated region body
PF: predicated region fallthrough
CT: control target
= control target key end

     0   :  { %9 = vsyncpa [#allocation3], 0  ;;  %s1706_s0 = inlined_call_operand.hbm [shape: f32[2,32,256], index: 0, kind: input, shape index: {}]   ;;  %s1707_s1 = inlined_call_operand.vmem [shape: f32[32,4], index: 1, kind: input, shape index: {}]   ;;  %s1708_s2 = inlined_call_operand.vmem [shape: f32[4,32], index: 2, kind: input, shape index: {}]   ;;  %s1709_s3 = inlined_call_operand.hbm [shape: f32[512,256], index: 3, kind: input, shape index: {}]   ;;  %s1710_s4 = inlined_call_operand.hbm [shape: f32[2,32,256], index: 4, kind: output, shape index: {}]  }
   0x1   :  { %11 = vsyncpa [#allocation3 + $0x1], 0 }
   0x2   :  { %12 = vsyncpa [#allocation6], 0 }
   0x3   :  { %13 = vsyncpa [#allocation4], 0 }
   0x4   :  { %15 = vsyncpa [#allocation4 + $0x1], 0  ;;  %s1386_s15 = smov 0   ;;  %s1388_s16 = smov 0  }
   0x5   :  { %s1390_s17 = smov 0   ;;  %s1392_s18 = smov 0  }
   0x6 LB: > { %s1407_s19 = sadd.s32 4294967295, %s1349_s18   ;;  %s962_s20 = sadd.s32 4294967294, %s1349_s18   ;;  %s1349_s18 = sphi %s1392_s18, %s1730_s18   ;;  %s1345_s17 = sphi %s1390_s17, %s1729_s17   ;;  %s1341_s16 = sphi %s1388_s16, %s1728_s16   ;;  %s1337_s15 = sphi %s1386_s15, %s1727_s15  }
   0x7   : > { %p41_p0 = scmp.ne.s32.totalorder %s1341_s16, %s1337_s15  ;;  %p1711_p1 = scmp.eq.s32.totalorder %s1407_s19, 0 }
   0x8   : > { %p134_p3 = scmp.eq.s32.totalorder %s962_s20, 1  ;;  %p963_p5 = scmp.ge.s32.totalorder %s1349_s18, 1 }
   0x9   : > { %p1416_p4 = por %p1711_p1, %p41_p0  ;;  %p141_p7 = scmp.lt.s32.totalorder %s1349_s18, 3 }
   0xa   : > { %p1421_p6 = por %p134_p3, %p41_p0  ;;  %s1351_s24 = smov [#allocation5]  }
   0xb   : > { %s1714_s21 = scalar_select %p1416_p4, 1, 0 }
   0xc   : > { %s1715_s22 = scalar_select %p1421_p6, 1, 0 }
   0xd   : > { %p1426_p8 = pnand %p963_p5, %p141_p7  ;;  %s159_s25 = sshll.u32 %s1351_s24, 4  ;;  %s1430_s25 = int_to_ptr.vmem [resolvable:$true] %s159_s25 }
   0xe   : > { %s1442_s27 = sadd.s32 1, %s1349_s18   ;;  %s28_s28 = sadd.s32 1, %s1345_s17 }
   0xf   : > { %s1716_s23 = scalar_select %p1426_p8, 1, 0 }
  0x10   : > { %p1153_p9 = pneg %p1426_p8  ;;  %s25_s29 = ssub.s32 %s1349_s18, %s1442_s27 }
  0x11   : > { %s1221_s6 = scalar_lea.hbm %s1709_s3, 16384 }
  0x12   : > { %p1437_p11 = pnand %p1153_p9, %p1711_p1  ;;  %p1222_p12 = scmp.ne.s32.totalorder %s1709_s3, %s1221_s6 }
  0x13   : > { %p1228_p5 = scmp.lt.u32.totalorder %s1221_s6, %s1709_s3 }
  0x14   : > { %p1223_p13 = pneg %p1437_p11 }
  0x16   : > { %p1224_p0 = pnand %p1223_p13, %p1222_p12 }
  0x18   : > { %p1225_p3 = pneg %p1224_p0 }
  0x1a   : > { %p1230_p7 = pnand %p1228_p5, %p1225_p3 }
  0x1c   : > { %1233 = shalt.err (!%p1230_p7)
}
  0x1d   : > { %s1234_s11 = scalar_lea.vmem %s1430_s25, 16384  ;;  %p1242_p2 = scmp.lt.s32.totalorder %s1430_s25, %s1430_s25 }
  0x1e   : > { %p1235_p9 = scmp.ne.s32.totalorder %s1430_s25, %s1234_s11  ;;  %p1243_p6 = scmp.lt.s32.totalorder %s1234_s11, %s1234_s11 }
  0x20   : > { %p1237_p10 = pnand %p1235_p9, %p1223_p13  ;;  %p1244_p4 = por %p1243_p6, %p1242_p2 }
  0x22   : > { %p1238_p1 = pneg %p1237_p10 }
  0x24   : > { %p1245_p8 = pnand %p1244_p4, %p1238_p1 }
  0x26   : > { %1248 = shalt.err (!%p1245_p8)
}
  0x27   : > { %s1352_s12 = smov 256   ;;  %s1353_s13 = smov 16  }
  0x28   : > { %1156 = dma.hbm_to_vmem [thread:$0]  (!%p1437_p11), %s1709_s3, 16384, %s1430_s25, [#allocation6], %s1352_s12, %s1352_s12, %s1353_s13  }
  0x29   : > { %p26_p1 = scmp.eq.s32.totalorder %s25_s29, 0  ;;  %p35_p2 = scmp.ne.s32.totalorder %s1345_s17, %s1341_s16 }
  0x2a   : > { %p36_p4 = scmp.eq.s32.totalorder %s1349_s18, 0  ;;  %p1166_p6 = scmp.lt.s32.totalorder %s1349_s18, 2 }
  0x2b   : > { %s1476_s24 = scalar_select %p26_p1, %s1345_s17, %s28_s28  }
  0x2c   : > { %p37_p8 = por %p36_p4, %p35_p2  ;;  %p1718_p10 = scmp.eq.s32.totalorder %s1407_s19, 1 }
  0x2d   : > { %s173_s26 = sand.u32 1, %s1345_s17   ;;  %s984_s5 = sshll.u32 %s1349_s18, 10 }
  0x2e   : > { %p1480_p12 = por %p1718_p10, %p35_p2  ;;  %s966_s6 = sshll.u32 %s173_s26, 6 }
  0x2f   : > { %s1489_s9 = scalar_lea.hbm %s1706_s0, %s984_s5  ;;  %s177_s25 = scalar_lea.vmem [#allocation2], %s966_s6 }
  0x30   : > { %s184_s28 = sshll.u32 %s177_s25, 4  ;;  %p1491_p11 = pnand %p1166_p6, %p37_p8  ;;  %s1495_s28 = int_to_ptr.vmem [resolvable:$true] %s184_s28 }
  0x31   : > { %s1497_s10 = scalar_lea.sflag [#allocation3], %s173_s26  ;;  %s1249_s11 = scalar_lea.hbm %s1489_s9, 1024 }
  0x32   : > { %p1250_p13 = scmp.ne.s32.totalorder %s1489_s9, %s1249_s11  ;;  %p1251_p0 = pneg %p1491_p11 }
  0x33   : > { %s1254_s5 = scalar_lea.hbm %s1706_s0, 2048  ;;  %p1255_p7 = scmp.lt.u32.totalorder %s1489_s9, %s1706_s0 }
  0x34   : > { %p1252_p3 = pnand %p1251_p0, %p1250_p13  ;;  %p1256_p9 = scmp.lt.u32.totalorder %s1254_s5, %s1249_s11 }
  0x35   : > { %p1258_p2 = scmp.lt.u32.totalorder %s1249_s11, %s1489_s9 }
  0x36   : > { %p1253_p5 = pneg %p1252_p3  ;;  %p1257_p1 = por %p1256_p9, %p1255_p7 }
  0x38   : > { %p1259_p4 = por %p1258_p2, %p1257_p1 }
  0x3a   : > { %p1260_p6 = pnand %p1259_p4, %p1253_p5 }
  0x3c   : > { %1263 = shalt.err (!%p1260_p6)
}
  0x3d   : > { %s1264_s26 = scalar_lea.vmem %s1495_s28, 1024  ;;  %s1354_s8 = smov [#allocation2]  }
  0x3e   : > { %p1265_p8 = scmp.ne.s32.totalorder %s1495_s28, %s1264_s26  ;;  %s1269_s25 = sshll.u32 %s1354_s8, 4  ;;  %s1270_s25 = int_to_ptr.vmem [resolvable:$false] %s1269_s25 }
  0x3f   : > { %s1271_s14 = scalar_lea.vmem %s1270_s25, 2048  ;;  %p1272_p3 = scmp.lt.s32.totalorder %s1495_s28, %s1270_s25 }
  0x40   : > { %p1267_p10 = pnand %p1265_p8, %p1251_p0  ;;  %p1273_p7 = scmp.lt.s32.totalorder %s1271_s14, %s1264_s26 }
  0x42   : > { %p1268_p13 = pneg %p1267_p10  ;;  %p1274_p9 = por %p1273_p7, %p1272_p3 }
  0x44   : > { %p1275_p1 = pnand %p1274_p9, %p1268_p13 }
  0x46   : > { %1278 = shalt.err (!%p1275_p1)
}
  0x47   : > { %1160 = dma.hbm_to_vmem [thread:$0]  (!%p1491_p11), %s1489_s9, 1024, %s1495_s28, %s1497_s10, %s1352_s12, %s1352_s12, %s1353_s13  }
  0x48   : > { %p1721_p0 = scmp.ne.s32.totalorder %s1716_s23, 0 }
  0x49   : > { %s1531_s11 = sand.u32 (!%p1721_p0), 1, %s1341_s16   ;;  %p1722_p5 = scmp.ne.s32.totalorder (!%p1721_p0), %s1714_s21, 0 }
  0x4a   : > { %196 = sbr.rel (%p1721_p0) target bundleno = 1110 (0x456), region = 36  ;;  %s970_s20 = sshll.u32 (!%p1721_p0), %s1531_s11, 6 }
  0x4b   : > { %s199_s5 = scalar_lea.sflag (!%p1721_p0), [#allocation3], %s1531_s11  ;;  %s202_s29 = scalar_lea.vmem (!%p1721_p0), [#allocation2], %s970_s20 }
  0x51   : > { %1324 = dma.done.wait (%p1722_p5), %s199_s5, 1024  }
  0x52   : > { %1326 = vsyncadd (%p1722_p5), %s199_s5, 4294966272  ;;  %p1723_p11 = scmp.eq.s32.totalorder %s1407_s19, 0 }
  0x54   : > { %1328 = dma.done.wait (%p1723_p11), [#allocation6], 16384   ;;  %p1724_p2 = pmov %p1723_p11 }
  0x55   : > { %v1545_v0 = vld [vmem:[%s202_s29 + $0x20] sm:$0xff]  ;;  %v1547_v1 = vld [vmem:[%s202_s29 + $0x28] sm:$0xff]  ;;  %v1555_v5 = vld [vmem:[%s202_s29 + $0x30] sm:$0xff]  ;;  %v1355_v19 = vmov 0.0|0.0   ;;  %vm1356_vm0 = vmmov 0   ;;  %v1357_v23 = vmov 0.0   ;;  %v271_v24 = vlaneseq }
  0x56   : > { %1330 = vsyncadd (%p1724_p2), [#allocation6], 4294950912  ;;  %v1549_v2 = vld [vmem:[%s202_s29] sm:$0xff]  ;;  %v245_v3 = vadd.f32 %v1547_v1, %v1545_v0  ;;  %v1553_v4 = vld [vmem:[%s202_s29 + $0x8] sm:$0xff]  ;;  %v261_v15 = vmax.f32 %v1545_v0, %v1547_v1  ;;  %1009 = vmatprep.subr.bf16.mxu0 %v1355_v19  ;;  %1001 = vmatprep.mubr.msk.f32.mxu0 %vm1356_vm0, %v1357_v23  ;;  %vm282_vm1 = vcmask 130112   ;;  %vm289_vm2 = vcmask 195712  }
  0x57   : > { %v1557_v6 = vld [vmem:[%s202_s29 + $0x38] sm:$0xff]  ;;  %v239_v7 = vadd.f32 %v1553_v4, %v1549_v2  ;;  %v1561_v8 = vld [vmem:[%s202_s29 + $0x10] sm:$0xff]  ;;  %v255_v13 = vmax.f32 %v1549_v2, %v1553_v4  ;;  %v325_v16 = vld [vmem:[%s1707_s1] sm:$0xff]  ;;  %1004 = vmatprep.subr.mxu1 %v1357_v23  ;;  %1006 = vmatprep.mubr.msk.f32.mxu1 %vm1356_vm0, %v1357_v23  ;;  %v272_v25 = vand.u32 127, %v271_v24  ;;  %v1589_v28 = vshrl.u32 %v271_v24, 7  ;;  %s985_s8 = sshll.u32 %s1407_s19, 10 }
  0x58   : > { %v1563_v9 = vld [vmem:[%s202_s29 + $0x18] sm:$0xff]  ;;  %246 = vadd.xlane.f32.xlu1 %v245_v3  ;;  %v248_v10 = vadd.f32 %v1557_v6, %v1555_v5  ;;  %v264_v14 = vmax.f32 %v1555_v5, %v1557_v6  ;;  %v326_v17 = vld [vmem:[%s1707_s1 + $0x8] sm:$0xff]  ;;  %v327_v20 = vld [vmem:[%s1707_s1 + $0x10] sm:$0xff]  ;;  %vm296_vm3 = vcmask 261312   ;;  %vm323_vm4 = vcmask 1040384   ;;  %s230_s25 = scalar_lea.vmem [#allocation7], %s970_s20  ;;  %s1656_s19 = scalar_lea.hbm %s1710_s4, %s985_s8 }
  0x59   : > { %240 = vadd.xlane.f32.xlu0 %v239_v7  ;;  %v242_v11 = vadd.f32 %v1563_v9, %v1561_v8  ;;  %v258_v12 = vmax.f32 %v1561_v8, %v1563_v9  ;;  %v1010_v18 = vpack.c.bf16 %v326_v17, %v325_v16  ;;  %v328_v21 = vld [vmem:[%s1707_s1 + $0x18] sm:$0xff]  ;;  %v277_v27 = vadd.s32 4294967288, %v272_v25  ;;  %v404_v61 = vld [vmem:[%s1708_s2] sm:$0xf]  ;;  %v560_v7 = vld [vmem:[#allocation5 + $0x8] sm:$0xff]  ;;  %s879_s14 = sshll.u32 %s230_s25, 4  ;;  %s1658_s14 = int_to_ptr.vmem [resolvable:$true] %s879_s14 }
  0x5a   : > { %v1013_v22 = vpack.c.bf16 %v328_v21, %v327_v20  ;;  %v284_v30 = vadd.s32 4294967280, %v272_v25  ;;  %v275_v33 = vsub.s32 %v272_v25, %v1589_v28  ;;  %v291_v35 = vadd.s32 4294967272, %v272_v25  ;;  %v564_v20 = vld [vmem:[#allocation5 + $0x28] sm:$0xff]  ;;  %v630_v24 = vld [vmem:[#allocation5 + $0x238] sm:$0xff]  ;;  %s866_s20 = scalar_lea.sflag [#allocation4], %s1531_s11  ;;  %s1279_s21 = scalar_lea.vmem %s1658_s14, 1024 }
  0x5b   : > { %1011 = vmatpush3.bf16.msra.mxu0 %v1010_v18  ;;  %v280_v32 = vsub.s32 %v277_v27, %v1589_v28  ;;  %vm329_vm5 = vcmask 261120   ;;  %vm409_vm6 = vcmask 1043456   ;;  %vm405_vm7 = vcmask 31744   ;;  %v623_v18 = vld [vmem:[#allocation5 + $0x200] sm:$0xff]  ;;  %v628_v23 = vld [vmem:[#allocation5 + $0x228] sm:$0xff]  ;;  %p1280_p4 = scmp.ne.s32.totalorder %s1658_s14, %s1279_s21  ;;  %s1358_s23 = smov [#allocation7]  }
  0x5c   : > { %249 = vadd.xlane.f32.xlu1 %v248_v10  ;;  %1012 = vmatprep.subr.bf16.mxu0 %v1355_v19  ;;  %v287_v38 = vsub.s32 %v284_v30, %v1589_v28  ;;  %v294_v43 = vsub.s32 %v291_v35, %v1589_v28  ;;  %v562_v10 = vld [vmem:[#allocation5 + $0x18] sm:$0xff]  ;;  %v625_v19 = vld [vmem:[#allocation5 + $0x210] sm:$0xff]  ;;  %v563_v27 = vld [vmem:[#allocation5 + $0x20] sm:$0xff]  ;;  %s1283_s12 = sshll.u32 %s1358_s23, 4  ;;  %s1284_s12 = int_to_ptr.vmem [resolvable:$false] %s1283_s12 }
  0x5d   : > { %243 = vadd.xlane.f32.xlu0 %v242_v11  ;;  %1005 = vmatpush3.msk.msra.mxu1 %vm409_vm6, %v404_v61  ;;  %v624_v11 = vld [vmem:[#allocation5 + $0x208] sm:$0xff]  ;;  %v1081_v21 = vpack.c.bf16 %v625_v19, %v623_v18  ;;  %v627_v30 = vld [vmem:[#allocation5 + $0x220] sm:$0xff]  ;;  %p1281_p6 = pnand %p1280_p4, %p1480_p12  ;;  %s1285_s13 = scalar_lea.vmem %s1284_s12, 2048 }
  0x5e   : > { %v579_v19 = vld [vmem:[#allocation5 + $0xa0] sm:$0xff]  ;;  %p1286_p10 = scmp.lt.s32.totalorder %s1658_s14, %s1284_s12  ;;  %p1287_p13 = scmp.lt.s32.totalorder %s1285_s13, %s1279_s21 }
  0x5f   : > { %1014 = vmatpush3.bf16.msra.mxu0 %v1013_v22  ;;  %v566_v22 = vld [vmem:[#allocation5 + $0x38] sm:$0xff]  ;;  %p1282_p8 = pneg %p1281_p6 }
  0x60   : > { %259 = vmax.xlane.f32.xlu1 %v258_v12  ;;  %v1015_v12 = vpack.c.bf16 %v562_v10, %v560_v7  ;;  %v1019_v25 = vpack.c.bf16 %v566_v22, %v564_v20  ;;  %v639_v7 = vld [vmem:[#allocation5 + $0x280] sm:$0xff]  ;;  %v581_v20 = vld [vmem:[#allocation5 + $0xb0] sm:$0xff]  ;;  %p1288_p3 = por %p1287_p13, %p1286_p10 }
  0x61   : > { %256 = vmax.xlane.f32.xlu0 %v255_v13  ;;  %v626_v13 = vld [vmem:[#allocation5 + $0x218] sm:$0xff] }
  0x62   : > { %v1079_v16 = vpack.c.bf16 %v626_v13, %v624_v11  ;;  %1016 = vmatprep.subr.bf16.mxu0 %v1015_v12  ;;  %v641_v11 = vld [vmem:[#allocation5 + $0x290] sm:$0xff]  ;;  %v580_v12 = vld [vmem:[#allocation5 + $0xa8] sm:$0xff]  ;;  %v582_v13 = vld [vmem:[#allocation5 + $0xb8] sm:$0xff]  ;;  %p1289_p7 = pnand %p1288_p3, %p1282_p8 }
  0x63   : > { %v1035_v18 = vpack.c.bf16 %v582_v13, %v580_v12 }
  0x64   : > { %265 = vmax.xlane.f32.xlu1 %v264_v14  ;;  %v559_v14 = vld [vmem:[#allocation5] sm:$0xff]  ;;  %1080 = vmatprep.subr.bf16.mxu1 %v1079_v16 }
  0x65   : > { %262 = vmax.xlane.f32.xlu0 %v261_v15  ;;  %v561_v15 = vld [vmem:[#allocation5 + $0x10] sm:$0xff] }
  0x66   : > { %v1017_v17 = vpack.c.bf16 %v561_v15, %v559_v14  ;;  %v644_v14 = vld [vmem:[#allocation5 + $0x2a8] sm:$0xff]  ;;  %v646_v15 = vld [vmem:[#allocation5 + $0x2b8] sm:$0xff] }
  0x67   : > { %v1099_v22 = vpack.c.bf16 %v646_v15, %v644_v14 }
  0xe5   : > { %v247_v26 = vpop.xlane.xlu1 %246 }
  0xe6   : > { %v241_v29 = vpop.xlane.xlu0 %240  ;;  %v253_v39 = vmul.f32 0.00390625, %v247_v26  ;;  %v1083_v26 = vpack.c.bf16 %v630_v24, %v628_v23  ;;  %v645_v23 = vld [vmem:[#allocation5 + $0x2b0] sm:$0xff]  ;;  %v584_v24 = vld [vmem:[#allocation5 + $0xc8] sm:$0xff] }
  0xe7   : > { %v251_v34 = vmul.f32 0.00390625, %v241_v29  ;;  %v565_v29 = vld [vmem:[#allocation5 + $0x30] sm:$0xff] }
  0xe8   : > { %v288_v49 = vrot.slane %v253_v39, %v287_v38  ;;  %v567_v39 = vld [vmem:[#allocation5 + $0x40] sm:$0xff] }
  0xe9   : > { %v250_v31 = vpop.xlane.xlu1 %249  ;;  %v276_v42 = vrot.slane %v251_v34, %v275_v33  ;;  %v570_v34 = vld [vmem:[#allocation5 + $0x58] sm:$0xff] }
  0xea   : > { %v244_v36 = vpop.xlane.xlu0 %243  ;;  %v254_v44 = vmul.f32 0.00390625, %v250_v31  ;;  %v1021_v31 = vpack.c.bf16 %v565_v29, %v563_v27  ;;  %v650_v27 = vld [vmem:[#allocation5 + $0x2d8] sm:$0xff]  ;;  %v1037_v29 = vpack.c.bf16 %v581_v20, %v579_v19  ;;  %v595_v19 = vld [vmem:[#allocation5 + $0x120] sm:$0xff]  ;;  %v597_v20 = vld [vmem:[#allocation5 + $0x130] sm:$0xff] }
  0xeb   : > { %v252_v37 = vmul.f32 0.00390625, %v244_v36 }
  0xec   : > { %v295_v51 = vrot.slane %v254_v44, %v294_v43 }
  0xed   : > { %v281_v40 = vrot.slane %v252_v37, %v280_v32  ;;  %v260_v41 = vpop.xlane.xlu1 %259  ;;  %v632_v37 = vld [vmem:[#allocation5 + $0x248] sm:$0xff] }
  0xee   : > { %v257_v45 = vpop.xlane.xlu0 %256  ;;  %v310_v47 = vrot.slane %v260_v41, %v280_v32  ;;  %v629_v32 = vld [vmem:[#allocation5 + $0x230] sm:$0xff] }
  0xef   : > { %v283_v46 = vsel %vm282_vm1, %v281_v40, %v276_v42  ;;  %v306_v48 = vrot.slane %v257_v45, %v275_v33  ;;  %v568_v33 = vld [vmem:[#allocation5 + $0x48] sm:$0xff]  ;;  %v1085_v35 = vpack.c.bf16 %v629_v32, %v627_v30  ;;  %v569_v41 = vld [vmem:[#allocation5 + $0x50] sm:$0xff]  ;;  %v631_v42 = vld [vmem:[#allocation5 + $0x240] sm:$0xff] }
  0xf0   : > { %v290_v55 = vsel %vm289_vm2, %v288_v49, %v283_v46  ;;  %v1023_v36 = vpack.c.bf16 %v570_v34, %v568_v33  ;;  %v1025_v44 = vpack.c.bf16 %v569_v41, %v567_v39  ;;  %v572_v45 = vld [vmem:[#allocation5 + $0x68] sm:$0xff]  ;;  %v574_v46 = vld [vmem:[#allocation5 + $0x78] sm:$0xff]  ;;  %v583_v32 = vld [vmem:[#allocation5 + $0xc0] sm:$0xff] }
  0xf1   : > { %v266_v50 = vpop.xlane.xlu1 %265  ;;  %v311_v56 = vsel %vm282_vm1, %v310_v47, %v306_v48  ;;  %v297_v59 = vsel %vm296_vm3, %v295_v51, %v290_v55  ;;  %v636_v47 = vld [vmem:[#allocation5 + $0x268] sm:$0xff]  ;;  %v1027_v49 = vpack.c.bf16 %v574_v46, %v572_v45  ;;  %v571_v51 = vld [vmem:[#allocation5 + $0x60] sm:$0xff]  ;;  %v637_v55 = vld [vmem:[#allocation5 + $0x270] sm:$0xff] }
  0xf2   : > { %v263_v52 = vpop.xlane.xlu0 %262  ;;  %v320_v53 = vrot.slane %v266_v50, %v294_v43  ;;  %v633_v43 = vld [vmem:[#allocation5 + $0x250] sm:$0xff]  ;;  %v638_v50 = vld [vmem:[#allocation5 + $0x278] sm:$0xff]  ;;  %v647_v34 = vld [vmem:[#allocation5 + $0x2c0] sm:$0xff] }
  0xf3   : > { %v315_v54 = vrot.slane %v263_v52, %v287_v38  ;;  %v634_v38 = vld [vmem:[#allocation5 + $0x258] sm:$0xff]  ;;  %v1089_v48 = vpack.c.bf16 %v633_v43, %v631_v42  ;;  %v573_v52 = vld [vmem:[#allocation5 + $0x70] sm:$0xff]  ;;  %v652_v39 = vld [vmem:[#allocation5 + $0x2e8] sm:$0xff] }
  0xf4   : > { %v1087_v40 = vpack.c.bf16 %v634_v38, %v632_v37  ;;  %v585_v33 = vld [vmem:[#allocation5 + $0xd0] sm:$0xff]  ;;  %v588_v37 = vld [vmem:[#allocation5 + $0xe8] sm:$0xff]  ;;  %v590_v38 = vld [vmem:[#allocation5 + $0xf8] sm:$0xff] }
  0xf5   : > { %v316_v57 = vsel %vm289_vm2, %v315_v54, %v311_v56  ;;  %v635_v54 = vld [vmem:[#allocation5 + $0x260] sm:$0xff]  ;;  %v576_v56 = vld [vmem:[#allocation5 + $0x88] sm:$0xff]  ;;  %v1041_v41 = vpack.c.bf16 %v585_v33, %v583_v32  ;;  %v1043_v43 = vpack.c.bf16 %v590_v38, %v588_v37  ;;  %v589_v45 = vld [vmem:[#allocation5 + $0xf0] sm:$0xff] }
  0xf6   : > { %v321_v58 = vsel %vm296_vm3, %v320_v53, %v316_v57  ;;  %v1091_v53 = vpack.c.bf16 %v638_v50, %v636_v47  ;;  %v578_v57 = vld [vmem:[#allocation5 + $0x98] sm:$0xff]  ;;  %v1093_v61 = vpack.c.bf16 %v637_v55, %v635_v54  ;;  %v651_v46 = vld [vmem:[#allocation5 + $0x2e0] sm:$0xff]  ;;  %v601_v33 = vld [vmem:[#allocation5 + $0x150] sm:$0xff] }
  0xf7   : > { %v324_v60 = vsel %vm323_vm4, %v297_v59, %v321_v58  ;;  %v640_v58 = vld [vmem:[#allocation5 + $0x288] sm:$0xff]  ;;  %v642_v59 = vld [vmem:[#allocation5 + $0x298] sm:$0xff]  ;;  %v599_v32 = vld [vmem:[#allocation5 + $0x140] sm:$0xff] }
  0xf8   : > { %1002 = vmatmul.mubr.msk.f32.vlgmr.msra.gmra.mrb[0].mxu0 %vm329_vm5, %v324_v60  ;;  %v1029_v60 = vpack.c.bf16 %v573_v52, %v571_v51  ;;  %v1095_v10 = vpack.c.bf16 %v642_v59, %v640_v58  ;;  %v594_v50 = vld [vmem:[#allocation5 + $0x118] sm:$0xff]  ;;  %v656_v51 = vld [vmem:[#allocation5 + $0x308] sm:$0xff]  ;;  %v655_v58 = vld [vmem:[#allocation5 + $0x300] sm:$0xff] }
  0xf9   : > { %1018 = vmatpush1.bf16.msra.mxu0 %v1017_v17  ;;  %v1097_v17 = vpack.c.bf16 %v641_v11, %v639_v7  ;;  %v658_v52 = vld [vmem:[#allocation5 + $0x318] sm:$0xff]  ;;  %v665_v37 = vld [vmem:[#allocation5 + $0x350] sm:$0xff] }
  0xfa   : > { %1020 = vmatprep.subr.bf16.mxu0 %v1019_v25  ;;  %v586_v25 = vld [vmem:[#allocation5 + $0xd8] sm:$0xff]  ;;  %v1111_v59 = vpack.c.bf16 %v658_v52, %v656_v51  ;;  %v608_v52 = vld [vmem:[#allocation5 + $0x188] sm:$0xff] }
  0xfd   : > { %1022 = vmatpush1.bf16.msra.mxu0 %v1021_v31  ;;  %v1039_v31 = vpack.c.bf16 %v586_v25, %v584_v24  ;;  %v661_v24 = vld [vmem:[#allocation5 + $0x330] sm:$0xff] }
  0xfe   : > { %1024 = vmatprep.subr.bf16.mxu0 %v1023_v36  ;;  %v649_v36 = vld [vmem:[#allocation5 + $0x2d0] sm:$0xff] }
  0xff   : > { %v1105_v42 = vpack.c.bf16 %v649_v36, %v647_v34  ;;  %v663_v36 = vld [vmem:[#allocation5 + $0x340] sm:$0xff] }
 0x100   : > { %v1121_v38 = vpack.c.bf16 %v665_v37, %v663_v36  ;;  %v684_v36 = vld [vmem:[#allocation5 + $0x3e8] sm:$0xff]  ;;  %v686_v37 = vld [vmem:[#allocation5 + $0x3f8] sm:$0xff] }
 0x101   : > { %1026 = vmatpush1.bf16.msra.mxu0 %v1025_v44  ;;  %v587_v44 = vld [vmem:[#allocation5 + $0xe0] sm:$0xff] }
 0x102   : > { %1028 = vmatprep.subr.bf16.mxu0 %v1027_v49  ;;  %v592_v49 = vld [vmem:[#allocation5 + $0x108] sm:$0xff] }
 0x103   : > { %v1047_v55 = vpack.c.bf16 %v594_v50, %v592_v49  ;;  %v669_v49 = vld [vmem:[#allocation5 + $0x370] sm:$0xff]  ;;  %v1601_v50 = vsub.s32 0, %v1589_v28 }
 0x105   : > { %1030 = vmatpush1.bf16.msra.mxu0 %v1029_v60  ;;  %v657_v60 = vld [vmem:[#allocation5 + $0x310] sm:$0xff] }
 0x1cb   : > { %v399_v62 = vpop.f32.mrb[0].mxu0 }
 0x1cc   : > { %v403_v63 = vmax.f32 %v399_v62, 0.0  ;;  %v1003_v3 = vpop.f32.mrb[1].mxu0  ;;  %v1031_v62 = vpack.c.bf16 %v578_v57, %v576_v56  ;;  %v591_v56 = vld [vmem:[#allocation5 + $0x100] sm:$0xff]  ;;  %v593_v57 = vld [vmem:[#allocation5 + $0x110] sm:$0xff] }
 0x1cd   : > { %v577_v3 = vld [vmem:[#allocation5 + $0x90] sm:$0xff]  ;;  %v1049_v7 = vpack.c.bf16 %v593_v57, %v591_v56  ;;  %v674_v56 = vld [vmem:[#allocation5 + $0x398] sm:$0xff]  ;;  %v607_v57 = vld [vmem:[#allocation5 + $0x180] sm:$0xff] }
 0x1ce   : > { %1007 = vmatmul.mubr.msk.f32.vlgmr.msra.gmra.mrb[0].mxu1 %vm405_vm7, %v403_v63  ;;  %v575_v63 = vld [vmem:[#allocation5 + $0x80] sm:$0xff]  ;;  %1032 = vmatprep.subr.bf16.mxu0 %v1031_v62  ;;  %v598_v62 = vld [vmem:[#allocation5 + $0x138] sm:$0xff] }
 0x1cf   : > { %1082 = vmatpush1.bf16.msra.mxu1 %v1081_v21  ;;  %v1033_v16 = vpack.c.bf16 %v577_v3, %v575_v63  ;;  %v643_v21 = vld [vmem:[#allocation5 + $0x2a0] sm:$0xff]  ;;  %v660_v63 = vld [vmem:[#allocation5 + $0x328] sm:$0xff]  ;;  %v662_v3 = vld [vmem:[#allocation5 + $0x338] sm:$0xff] }
 0x1d0   : > { %1084 = vmatprep.subr.bf16.mxu1 %v1083_v26  ;;  %v648_v26 = vld [vmem:[#allocation5 + $0x2c8] sm:$0xff]  ;;  %v1101_v30 = vpack.c.bf16 %v645_v23, %v643_v21  ;;  %v1115_v12 = vpack.c.bf16 %v662_v3, %v660_v63  ;;  %v659_v21 = vld [vmem:[#allocation5 + $0x320] sm:$0xff]  ;;  %v1053_v23 = vpack.c.bf16 %v597_v20, %v595_v19  ;;  %v673_v63 = vld [vmem:[#allocation5 + $0x390] sm:$0xff] }
 0x1d1   : > { %1034 = vmatpush1.bf16.msra.mxu0 %v1033_v16  ;;  %v1117_v25 = vpack.c.bf16 %v661_v24, %v659_v21  ;;  %v677_v19 = vld [vmem:[#allocation5 + $0x3b0] sm:$0xff]  ;;  %v616_v21 = vld [vmem:[#allocation5 + $0x1c8] sm:$0xff] }
 0x1d2   : > { %1036 = vmatprep.subr.bf16.mxu0 %v1035_v18 }
 0x1d3   : > { %1086 = vmatpush1.bf16.msra.mxu1 %v1085_v35  ;;  %v1103_v35 = vpack.c.bf16 %v650_v27, %v648_v26  ;;  %v600_v26 = vld [vmem:[#allocation5 + $0x148] sm:$0xff]  ;;  %v602_v27 = vld [vmem:[#allocation5 + $0x158] sm:$0xff] }
 0x1d4   : > { %1088 = vmatprep.subr.bf16.mxu1 %v1087_v40  ;;  %v654_v40 = vld [vmem:[#allocation5 + $0x2f8] sm:$0xff] }
 0x1d5   : > { %1038 = vmatpush1.bf16.msra.mxu0 %v1037_v29  ;;  %v1107_v47 = vpack.c.bf16 %v654_v40, %v652_v39  ;;  %v664_v29 = vld [vmem:[#allocation5 + $0x348] sm:$0xff]  ;;  %v606_v40 = vld [vmem:[#allocation5 + $0x178] sm:$0xff] }
 0x1d6   : > { %1040 = vmatprep.subr.bf16.mxu0 %v1039_v31  ;;  %v666_v31 = vld [vmem:[#allocation5 + $0x358] sm:$0xff]  ;;  %v604_v39 = vld [vmem:[#allocation5 + $0x168] sm:$0xff] }
 0x1d7   : > { %1090 = vmatpush1.bf16.msra.mxu1 %v1089_v48  ;;  %v653_v48 = vld [vmem:[#allocation5 + $0x2f0] sm:$0xff]  ;;  %v1119_v34 = vpack.c.bf16 %v666_v31, %v664_v29  ;;  %v679_v31 = vld [vmem:[#allocation5 + $0x3c0] sm:$0xff] }
 0x1d8   : > { %1092 = vmatprep.subr.bf16.mxu1 %v1091_v53  ;;  %v1045_v53 = vpack.c.bf16 %v589_v45, %v587_v44  ;;  %v1109_v54 = vpack.c.bf16 %v653_v48, %v651_v46  ;;  %v603_v44 = vld [vmem:[#allocation5 + $0x160] sm:$0xff]  ;;  %v605_v45 = vld [vmem:[#allocation5 + $0x170] sm:$0xff] }
 0x1d9   : > { %1042 = vmatpush1.bf16.msra.mxu0 %v1041_v41  ;;  %v668_v41 = vld [vmem:[#allocation5 + $0x368] sm:$0xff]  ;;  %v667_v48 = vld [vmem:[#allocation5 + $0x360] sm:$0xff] }
 0x1da   : > { %1044 = vmatprep.subr.bf16.mxu0 %v1043_v43  ;;  %v670_v43 = vld [vmem:[#allocation5 + $0x378] sm:$0xff]  ;;  %v1125_v51 = vpack.c.bf16 %v669_v49, %v667_v48 }
 0x1db   : > { %1094 = vmatpush1.bf16.msra.mxu1 %v1093_v61  ;;  %v596_v61 = vld [vmem:[#allocation5 + $0x128] sm:$0xff]  ;;  %v1123_v46 = vpack.c.bf16 %v670_v43, %v668_v41  ;;  %v621_v41 = vld [vmem:[#allocation5 + $0x1f0] sm:$0xff] }
 0x1dc   : > { %1096 = vmatprep.subr.bf16.mxu1 %v1095_v10  ;;  %v1113_v10 = vpack.c.bf16 %v657_v60, %v655_v58  ;;  %v1051_v11 = vpack.c.bf16 %v598_v62, %v596_v61  ;;  %v609_v58 = vld [vmem:[#allocation5 + $0x190] sm:$0xff]  ;;  %v671_v62 = vld [vmem:[#allocation5 + $0x380] sm:$0xff] }
 0x1dd   : > { %1046 = vmatpush1.bf16.msra.mxu0 %v1045_v53  ;;  %v610_v53 = vld [vmem:[#allocation5 + $0x198] sm:$0xff]  ;;  %v1065_v61 = vpack.c.bf16 %v609_v58, %v607_v57  ;;  %v1129_v3 = vpack.c.bf16 %v673_v63, %v671_v62 }
 0x1de   : > { %1048 = vmatprep.subr.bf16.mxu0 %v1047_v55  ;;  %v1063_v55 = vpack.c.bf16 %v610_v53, %v608_v52 }
 0x1df   : > { %1098 = vmatpush1.bf16.msra.mxu1 %v1097_v17 }
 0x1e0   : > { %1100 = vmatprep.subr.bf16.mxu1 %v1099_v22 }
 0x1e1   : > { %1050 = vmatpush1.bf16.msra.mxu0 %v1049_v7  ;;  %v612_v7 = vld [vmem:[#allocation5 + $0x1a8] sm:$0xff] }
 0x1e2   : > { %1052 = vmatprep.subr.bf16.mxu0 %v1051_v11  ;;  %v676_v11 = vld [vmem:[#allocation5 + $0x3a8] sm:$0xff] }
 0x1e3   : > { %1102 = vmatpush1.bf16.msra.mxu1 %v1101_v30  ;;  %v1055_v30 = vpack.c.bf16 %v602_v27, %v600_v26  ;;  %v615_v26 = vld [vmem:[#allocation5 + $0x1c0] sm:$0xff]  ;;  %v617_v27 = vld [vmem:[#allocation5 + $0x1d0] sm:$0xff] }
 0x1e4   : > { %1104 = vmatprep.subr.bf16.mxu1 %v1103_v35  ;;  %v1057_v35 = vpack.c.bf16 %v601_v33, %v599_v32  ;;  %v681_v32 = vld [vmem:[#allocation5 + $0x3d0] sm:$0xff]  ;;  %v620_v33 = vld [vmem:[#allocation5 + $0x1e8] sm:$0xff] }
 0x1e5   : > { %1054 = vmatpush1.bf16.msra.mxu0 %v1053_v23  ;;  %v680_v23 = vld [vmem:[#allocation5 + $0x3c8] sm:$0xff] }
 0x1e6   : > { %1056 = vmatprep.subr.bf16.mxu0 %v1055_v30  ;;  %v1073_v30 = vpack.c.bf16 %v617_v27, %v615_v26 }
 0x1e7   : > { %1106 = vmatpush1.bf16.msra.mxu1 %v1105_v42  ;;  %v1059_v42 = vpack.c.bf16 %v606_v40, %v604_v39  ;;  %v1139_v39 = vpack.c.bf16 %v686_v37, %v684_v36  ;;  %v619_v40 = vld [vmem:[#allocation5 + $0x1e0] sm:$0xff] }
 0x1e8   : > { %1108 = vmatprep.subr.bf16.mxu1 %v1107_v47  ;;  %v1061_v47 = vpack.c.bf16 %v605_v45, %v603_v44  ;;  %v1077_v43 = vpack.c.bf16 %v621_v41, %v619_v40  ;;  %v685_v44 = vld [vmem:[#allocation5 + $0x3f0] sm:$0xff] }
 0x1e9   : > { %1058 = vmatpush1.bf16.msra.mxu0 %v1057_v35  ;;  %v622_v35 = vld [vmem:[#allocation5 + $0x1f8] sm:$0xff] }
 0x1ea   : > { %1060 = vmatprep.subr.bf16.mxu0 %v1059_v42  ;;  %v683_v42 = vld [vmem:[#allocation5 + $0x3e0] sm:$0xff] }
 0x1eb   : > { %1110 = vmatpush1.bf16.msra.mxu1 %v1109_v54  ;;  %v672_v54 = vld [vmem:[#allocation5 + $0x388] sm:$0xff]  ;;  %v1141_v45 = vpack.c.bf16 %v685_v44, %v683_v42 }
 0x1ec   : > { %1112 = vmatprep.subr.bf16.mxu1 %v1111_v59  ;;  %v1127_v60 = vpack.c.bf16 %v674_v56, %v672_v54 }
 0x1ed   : > { %1062 = vmatpush1.bf16.msra.mxu0 %v1061_v47 }
 0x1ee   : > { %1064 = vmatprep.subr.bf16.mxu0 %v1063_v55 }
 0x1ef   : > { %1114 = vmatpush1.bf16.msra.mxu1 %v1113_v10  ;;  %v614_v10 = vld [vmem:[#allocation5 + $0x1b8] sm:$0xff] }
 0x1f0   : > { %1116 = vmatprep.subr.bf16.mxu1 %v1115_v12  ;;  %v1067_v12 = vpack.c.bf16 %v614_v10, %v612_v7 }
 0x1f1   : > { %1066 = vmatpush1.bf16.msra.mxu0 %v1065_v61 }
 0x1f2   : > { %1068 = vmatprep.subr.bf16.mxu0 %v1067_v12 }
 0x1f3   : > { %1118 = vmatpush1.bf16.msra.mxu1 %v1117_v25  ;;  %v682_v25 = vld [vmem:[#allocation5 + $0x3d8] sm:$0xff] }
 0x1f4   : > { %1120 = vmatprep.subr.bf16.mxu1 %v1119_v34  ;;  %v1135_v29 = vpack.c.bf16 %v682_v25, %v680_v23  ;;  %v1137_v34 = vpack.c.bf16 %v681_v32, %v679_v31 }
 0x1f7   : > { %1122 = vmatpush1.bf16.msra.mxu1 %v1121_v38  ;;  %v1075_v38 = vpack.c.bf16 %v622_v35, %v620_v33 }
 0x1f8   : > { %1124 = vmatprep.subr.bf16.mxu1 %v1123_v46 }
 0x1fb   : > { %1126 = vmatpush1.bf16.msra.mxu1 %v1125_v51 }
 0x1fc   : > { %1128 = vmatprep.subr.bf16.mxu1 %v1127_v60 }
 0x1ff   : > { %1130 = vmatpush1.bf16.msra.mxu1 %v1129_v3 }
 0x2a1   : > { %v479_v13 = vpop.f32.mrb[0].mxu1 }
 0x2a2   : > { %v484_v14 = vrot.slane %v479_v13, 1  ;;  %v1008_v15 = vpop.f32.mrb[1].mxu1 }
 0x2a3   : > { %v613_v15 = vld [vmem:[#allocation5 + $0x1b0] sm:$0xff] }
 0x2a4   : > { %v486_v16 = vadd.f32 %v484_v14, %v479_v13  ;;  %v678_v13 = vld [vmem:[#allocation5 + $0x3b8] sm:$0xff]  ;;  %v611_v14 = vld [vmem:[#allocation5 + $0x1a0] sm:$0xff] }
 0x2a6   : > { %v976_v17 = vmul.f32 -1.442695, %v486_v16  ;;  %v1131_v16 = vpack.c.bf16 %v678_v13, %v676_v11 }
 0x2a8   : > { %1209 = vpow2.f32 %v976_v17  ;;  %v1069_v17 = vpack.c.bf16 %v613_v15, %v611_v14  ;;  %1132 = vmatprep.subr.bf16.mxu1 %v1131_v16 }
 0x2aa   : > { %1070 = vmatpush1.bf16.msra.mxu0 %v1069_v17 }
 0x2b2   : > { %v1210_v18 = vpop.eup %1209 }
 0x2b3   : > { %v490_v22 = vadd.f32 1.0, %v1210_v18  ;;  %v675_v18 = vld [vmem:[#allocation5 + $0x3a0] sm:$0xff] }
 0x2b4   : > { %v1133_v20 = vpack.c.bf16 %v677_v19, %v675_v18 }
 0x2b5   : > { %1211 = vrcp.f32 %v490_v22  ;;  %v618_v22 = vld [vmem:[#allocation5 + $0x1d8] sm:$0xff] }
 0x2b6   : > { %v1071_v24 = vpack.c.bf16 %v618_v22, %v616_v21  ;;  %1134 = vmatpush1.bf16.msra.mxu1 %v1133_v20 }
 0x2b7   : > { %1136 = vmatprep.subr.bf16.mxu1 %v1135_v29 }
 0x2b8   : > { %1072 = vmatprep.subr.bf16.mxu0 %v1071_v24 }
 0x2b9   : > { %1074 = vmatpush1.bf16.msra.mxu0 %v1073_v30 }
 0x2ba   : > { %1138 = vmatpush1.bf16.msra.mxu1 %v1137_v34  ;;  %1076 = vmatprep.subr.bf16.mxu0 %v1075_v38 }
 0x2bb   : > { %1140 = vmatprep.subr.bf16.mxu1 %v1139_v39 }
 0x2bd   : > { %1078 = vmatpush1.bf16.msra.mxu0 %v1077_v43 }
 0x2be   : > { %1142 = vmatpush1.bf16.msra.mxu1 %v1141_v45 }
 0x2bf   : > { %v1212_v59 = vpop.eup %1211 }
 0x2c0   : > { %v496_v28 = vrot.slane %v1212_v59, %v1601_v50 }
 0x2c2   : > { %502 = vbcast.lane.b32.xlu1 %v496_v28, 264  ;;  %498 = vbcast.lane.b32.xlu0 %v496_v28, 256 }
 0x2c6   : > { %506 = vbcast.lane.b32.xlu1 %v496_v28, 272 }
 0x2ca   : > { %510 = vbcast.lane.b32.xlu1 %v496_v28, 280 }
 0x334   : > { %v503_v46 = vpop.permute.xlu1 %502  ;;  %v499_v47 = vpop.permute.xlu0 %498 }
 0x335   : > { %v1605_v48 = vmul.f32 %v503_v46, %v1561_v8  ;;  %v1608_v49 = vmul.f32 %v503_v46, %v1563_v9  ;;  %v1611_v51 = vmul.f32 %v499_v47, %v1549_v2  ;;  %v1614_v52 = vmul.f32 %v499_v47, %v1553_v4 }
 0x337   : > { %v520_v8 = vadd.f32 %v1605_v48, %v1611_v51  ;;  %v529_v9 = vadd.f32 %v1608_v49, %v1614_v52 }
 0x338   : > { %v507_v53 = vpop.permute.xlu1 %506 }
 0x339   : > { %v1617_v54 = vmul.f32 %v507_v53, %v1545_v0  ;;  %v1620_v55 = vmul.f32 %v507_v53, %v1547_v1 }
 0x33b   : > { %v521_v2 = vadd.f32 %v520_v8, %v1617_v54  ;;  %v530_v57 = vadd.f32 %v529_v9, %v1620_v55  ;;  %v541_v1 = vmax.f32 %v1611_v51, %v1617_v54  ;;  %v550_v58 = vmax.f32 %v1614_v52, %v1620_v55 }
 0x33c   : > { %v511_v56 = vpop.permute.xlu1 %510 }
 0x33d   : > { %v1629_v4 = vmul.f32 %v511_v56, %v1555_v5  ;;  %v1632_v0 = vmul.f32 %v511_v56, %v1557_v6 }
 0x33f   : > { %v522_v59 = vadd.f32 %v521_v2, %v1629_v4  ;;  %v531_v60 = vadd.f32 %v530_v57, %v1632_v0  ;;  %v542_v61 = vmax.f32 %v1605_v48, %v1629_v4  ;;  %v551_v5 = vmax.f32 %v1608_v49, %v1632_v0 }
 0x341   : > { %v523_v62 = vrot.slane %v522_v59, 4  ;;  %v532_v63 = vrot.slane %v531_v60, 4  ;;  %v543_v6 = vmax.f32 %v541_v1, %v542_v61  ;;  %v552_v28 = vmax.f32 %v550_v58, %v551_v5 }
 0x343   : > { %v524_v3 = vadd.f32 %v523_v62, %v522_v59  ;;  %v533_v7 = vadd.f32 %v532_v63, %v531_v60  ;;  %v544_v10 = vrot.slane %v543_v6, 4  ;;  %v553_v11 = vrot.slane %v552_v28, 4 }
 0x345   : > { %v525_v12 = vrot.slane %v524_v3, 2  ;;  %v545_v13 = vmax.f32 %v543_v6, %v544_v10  ;;  %v534_v14 = vrot.slane %v533_v7, 2  ;;  %v554_v15 = vmax.f32 %v552_v28, %v553_v11 }
 0x347   : > { %v526_v16 = vadd.f32 %v525_v12, %v524_v3  ;;  %v546_v17 = vrot.slane %v545_v13, 2  ;;  %v535_v18 = vadd.f32 %v534_v14, %v533_v7  ;;  %v555_v19 = vrot.slane %v554_v15, 2 }
 0x349   : > { %v536_v20 = vrot.slane %v535_v18, 1  ;;  %v556_v21 = vmax.f32 %v554_v15, %v555_v19  ;;  %v527_v22 = vrot.slane %v526_v16, 1  ;;  %v547_v23 = vmax.f32 %v545_v13, %v546_v17 }
 0x34b   : > { %v537_v24 = vadd.f32 %v536_v20, %v535_v18  ;;  %v557_v25 = vrot.slane %v556_v21, 1  ;;  %v528_v26 = vadd.f32 %v527_v22, %v526_v16  ;;  %v548_v27 = vrot.slane %v547_v23, 1 }
 0x34d   : > { %v540_v29 = vmul.f32 0.03125, %v537_v24  ;;  %v558_v30 = vmax.f32 %v556_v21, %v557_v25  ;;  %v539_v31 = vmul.f32 0.03125, %v528_v26  ;;  %v549_v32 = vmax.f32 %v547_v23, %v548_v27 }
 0x34f   : > { %751 = vmatprep.mubr.f32.mxu0 %v540_v29  ;;  %822 = vmatprep.mubr.f32.mxu1 %v558_v30 }
 0x350   : > { %752 = vmatmul.mubr.f32.vlgmr.msra.gmra.mrb[2].mxu0 %v539_v31  ;;  %823 = vmatmul.mubr.f32.vlgmr.msra.gmra.mrb[2].mxu1 %v549_v32 }
 0x423   : > { %v753_v33 = vpop.f32.mrb[2].mxu0  ;;  %v824_v34 = vpop.f32.mrb[2].mxu1 }
 0x424   : > { %v825_v35 = vadd.f32 %v824_v34, %v753_v33  ;;  %v755_v36 = vpop.f32.mrb[3].mxu0  ;;  %v826_v37 = vpop.f32.mrb[3].mxu1 }
 0x425   : > { %v827_v38 = vadd.f32 %v826_v37, %v755_v36 }
 0x426   : > { %v977_v39 = vmul.f32 -1.442695, %v825_v35 }
 0x427   : > { %v978_v40 = vmul.f32 -1.442695, %v827_v38 }
 0x428   : > { %1213 = vpow2.f32 %v977_v39 }
 0x429   : > { %1215 = vpow2.f32 %v978_v40 }
 0x432   : > { %v1214_v41 = vpop.eup %1213 }
 0x433   : > { %v1216_v42 = vpop.eup %1215  ;;  %v835_v43 = vadd.f32 1.0, %v1214_v41 }
 0x434   : > { %v836_v44 = vadd.f32 1.0, %v1216_v42 }
 0x435   : > { %1217 = vrcp.f32 %v835_v43 }
 0x436   : > { %1219 = vrcp.f32 %v836_v44 }
 0x43f   : > { %v1218_v45 = vpop.eup %1217 }
 0x440   : > { %v1220_v46 = vpop.eup %1219  ;;  %v844_v47 = vrot.slane %v1218_v45, %v1601_v50 }
 0x441   : > { %v848_v53 = vrot.slane %v1220_v46, %v1601_v50 }
 0x442   : > { %v849_v8 = vmul.f32 %v844_v47, %v1611_v51  ;;  %v851_v9 = vmul.f32 %v844_v47, %v1605_v48  ;;  %v853_v56 = vmul.f32 %v844_v47, %v1617_v54  ;;  %v855_v2 = vmul.f32 %v844_v47, %v1629_v4 }
 0x443   : > { %v850_v50 = vmul.f32 %v848_v53, %v1614_v52  ;;  %v852_v51 = vmul.f32 %v848_v53, %v1608_v49  ;;  %v854_v48 = vmul.f32 %v848_v53, %v1620_v55  ;;  %v856_v54 = vmul.f32 %v848_v53, %v1632_v0 }
 0x444   : > { %857 = vst [vmem:[%s230_s25] sm:$0xff] %v849_v8  ;;  %859 = vst [vmem:[%s230_s25 + $0x10] sm:$0xff] %v851_v9 }
 0x445   : > { %861 = vst [vmem:[%s230_s25 + $0x20] sm:$0xff] %v853_v56  ;;  %863 = vst [vmem:[%s230_s25 + $0x30] sm:$0xff] %v855_v2 }
 0x446   : > { %858 = vst [vmem:[%s230_s25 + $0x8] sm:$0xff] %v850_v50  ;;  %860 = vst [vmem:[%s230_s25 + $0x18] sm:$0xff] %v852_v51 }
 0x447   : > { %862 = vst [vmem:[%s230_s25 + $0x28] sm:$0xff] %v854_v48  ;;  %864 = vst [vmem:[%s230_s25 + $0x38] sm:$0xff] %v856_v54 }
 0x448   : > { %1292 = shalt.err (!%p1289_p7)
}
 0x449   : > { %s1293_s9 = scalar_lea.hbm %s1656_s19, 1024  ;;  %s1297_s6 = scalar_lea.hbm %s1710_s4, 2048 }
 0x44a   : > { %p1294_p9 = scmp.ne.s32.totalorder %s1656_s19, %s1293_s9  ;;  %p1298_p5 = scmp.lt.u32.totalorder %s1656_s19, %s1710_s4 }
 0x44b   : > { %p1299_p11 = scmp.lt.u32.totalorder %s1297_s6, %s1293_s9  ;;  %p1301_p4 = scmp.lt.u32.totalorder %s1293_s9, %s1656_s19 }
 0x44c   : > { %p1295_p1 = pnand %p1294_p9, %p1480_p12 }
 0x44d   : > { %p1300_p2 = por %p1299_p11, %p1298_p5 }
 0x44e   : > { %p1296_p0 = pneg %p1295_p1 }
 0x44f   : > { %p1302_p6 = por %p1301_p4, %p1300_p2 }
 0x451   : > { %p1303_p8 = pnand %p1302_p6, %p1296_p0 }
 0x453   : > { %1306 = shalt.err (!%p1303_p8)
}
 0x454   : > { %s1359_s8 = smov 256   ;;  %s1360_s25 = smov 16  }
 0x455   : > { %1151 = dma.vmem_to_hbm [thread:$0]  (%p1480_p12), %s1658_s14, 1024, %s1656_s19, %s866_s20, %s1359_s8, %s1359_s8, %s1360_s25  }
 0x456 PF: > { %s894_s5 = sand.u32 1, %s1337_s15   ;;  %p1725_p10 = scmp.ne.s32.totalorder %s1715_s22, 0 }
 0x457   : > { %p1726_p13 = scmp.ge.s32.totalorder %s1349_s18, 2  ;;  %s895_s29 = scalar_lea.sflag [#allocation4], %s894_s5 }
 0x459   : > { %p1162_p3 = pnand %p1726_p13, %p1725_p10 }
 0x45b   : > { %1332 = dma.done.wait (!%p1162_p3), %s895_s29, 1024  }
 0x45c   : > { %1334 = vsyncadd (!%p1162_p3), %s895_s29, 4294966272  ;;  %p18_p7 = scmp.ge.s32.totalorder %s1442_s27, 4   ;;  %s1727_s15 = smov %s1341_s16 }
 0x45d   : > { %s1728_s16 = smov %s1345_s17  ;;  %s1729_s17 = smov %s1476_s24 }
 0x45e   : > { %s1730_s18 = smov %s1442_s27  ;;  %20 = sbr.rel (!%p18_p7) target bundleno = 6 (0x6), region = 85 }
 0x465   :  { %900 = vsyncpa [#allocation3], 1 }
 0x466   :  { %902 = vsyncpa [#allocation3 + $0x1], 1 }
 0x467   :  { %903 = vsyncpa [#allocation6], 1 }
 0x468   :  { %904 = vsyncpa [#allocation4], 1 }
 0x469   :  { %906 = vsyncpa [#allocation4 + $0x1], 1 }

</bundles_post_ra>
